<compile_context>
chip_gen: v7x
topology: tpu7x:2x2x1
jax: 0.10.0
libtpu: 0.0.40
codegen_flags: <defaults>
</compile_context>

<pallas_src>
import jax
import jax.numpy as jnp
from jax import lax
from jax.experimental import pallas as pl
from jax.experimental.pallas import tpu as pltpu


def _round_up(x, m):
    return ((x + m - 1) // m) * m


def _pick_tile_h(H, W, target_lanes=4096):
    """Largest row tile with tile_h | H, (tile_h*W) % 128 == 0 and <= ~4096 lanes.

    Prefers a multiple of 256 lanes so each MXU pass is full on v6e/v7x (2x256^2).
    """
    valid = [th for th in range(1, H + 1) if H % th == 0 and (th * W) % 128 == 0]
    if not valid:
        raise ValueError("need some tile_h with H % tile_h == 0 and (tile_h*W) % 128 == 0")
    fitting = [th for th in valid if th * W <= target_lanes]
    if not fitting:
        return min(valid)
    pref = [th for th in fitting if (th * W) % 256 == 0]
    return max(pref) if pref else max(fitting)


def generator_upsample_block(x_nchw, weight_oihw, bias, alpha, up_scale=2,
                             compute_dtype=jnp.bfloat16, tile_h=None,
                             dot_precision=None):
    """Forward pass of _GeneratorUpsampleBlock. Input/output are NCHW (PyTorch layout).

    compute_dtype: dtype fed to the MXU (accumulation is always f32). Defaults to
        bfloat16 (native MXU rate, half the HBM/VMEM traffic). Pass jnp.float32 for
        exact parity with an f32 PyTorch module.
    tile_h: spatial row-tile height (must divide H, tile_h*W multiple of 128).
        None -> auto (largest tile <= ~4096 lanes).
    dot_precision: forwarded to the in-kernel jnp.dot. With f32 compute the default
        (None) TPU f32 matmul is not lax.Precision.HIGHEST; at large K (e.g. 9*64+ for
        production Cin=64) pass lax.Precision.HIGHEST if bit-tight f32 parity is
        required, or simply use the bf16 default and accept bf16-level accuracy.
    """
    N, Cin, H, W = x_nchw.shape
    Cout, Cin_w, KH, KW = weight_oihw.shape
    assert (KH, KW) == (3, 3) and Cin_w == Cin
    r = up_scale
    C = Cout // (r * r)
    assert C * r * r == Cout
    # TODO(synk): support W in (128, 256) that is not a multiple of 128 (needs a wider
    # halo block); production SR widths are multiples of 128 so this is not limiting.
    assert W <= 128 or W % 128 == 0, "W must be <=128 or a multiple of 128"

    HW = H * W
    K = 9 * Cin                                    # 9 taps * Cin (bias is a VPU add)
    cdt = jnp.dtype(compute_dtype) if compute_dtype is not None else jnp.dtype(x_nchw.dtype)
    out_dt = x_nchw.dtype
    # Emit the pre-shuffle intermediate in bf16 when computing in bf16: the XLA
    # PixelShuffle pass then moves half the bytes (it is HBM-bound).
    inter_dt = cdt if cdt == jnp.dtype(jnp.bfloat16) else jnp.dtype(out_dt)

    TH = _pick_tile_h(H, W) if tile_h is None else int(tile_h)
    assert H % TH == 0 and (TH * W) % 128 == 0, (H, W, TH)
    nT = H // TH                                   # spatial row tiles
    THW = TH * W                                   # lanes per tile (lane-dense output)

    # Halo fetch granularity along the flat HW axis: one 128-lane block (or W lanes
    # when W is already a multiple of 128) adjacent to the tile, clamped at the edges.
    HALO = W if W % 128 == 0 else 128
    BH = THW // HALO                               # halo-blocks per tile
    NB = HW // HALO                                # halo-blocks per image

    # Flat zero-padded tile layout inside the xpad scratch:
    #   [head slack][top halo row (W)][tile rows (TH*W)][bottom halo row (W)][tail slack]
    # mid_off is 128-aligned so the big tile copy is an aligned store; taps read at
    # LEAD + dh*W + dw, a plain (unaligned) lane-offset slice of length THW.
    mid_off = _round_up(W + 1, 128)
    LEAD = mid_off - W - 1
    pad_len = _round_up(mid_off + THW + W + 1, 128)
    head_len = mid_off - W                         # covers lane LEAD (read by a masked tap)
    tail_off = mid_off + THW + W
    tail_len = pad_len - tail_off                  # covers lane mid_off+THW+W (masked tap)

    # ---- one-time, tiny parameter relayouts (XLA, negligible) --------------------
    # w2[cout, (dh*3+dw)*Cin + cin] = weight[cout, cin, dh, dw]
    w2 = jnp.transpose(weight_oihw, (0, 2, 3, 1)).reshape(Cout, K).astype(cdt)
    b2 = jnp.asarray(bias, jnp.float32).reshape(Cout, 1)        # f32 VPU bias add
    a2 = jnp.asarray(alpha, jnp.float32).reshape(1, 1)          # SMEM scalar (PReLU)

    # Column masks for the flat-shift im2col: a flat shift by dh*W+dw wraps the last /
    # first element of a row into the neighbouring row; the dw=0 / dw=2 taps must see
    # zero padding there.  Pattern repeats every W lanes, so (2, THW) serves all tiles.
    col = jnp.arange(THW, dtype=jnp.int32) % W
    masks = jnp.stack([col != 0, col != (W - 1)]).astype(cdt)

    # Free reshape (contiguous dims) -> lane-dense flat input; no transpose/pad passes.
    x_flat = x_nchw.reshape(N, Cin, HW).astype(cdt)

    def kernel(x_mid_ref, x_top_ref, x_bot_ref, w_ref, b_ref, m_ref, a_ref,
               o_ref, xpad_ref, p_ref):
        # x_mid_ref : (1, Cin, THW)   tile rows, flat lanes
        # x_top_ref : (1, Cin, HALO)  block ending at the tile start (last W lanes = row above)
        # x_bot_ref : (1, Cin, HALO)  block starting at the tile end (first W lanes = row below)
        # w_ref     : (Cout, K)       folded 3x3 weights
        # b_ref     : (Cout, 1) f32   bias
        # m_ref     : (2, THW)        [left-column mask, right-column mask]
        # a_ref     : (1, 1) SMEM f32 PReLU alpha (single shared parameter)
        # o_ref     : (1, Cout, THW)  conv + bias + PReLU output (pre-pixel-shuffle)
        # xpad_ref  : (Cin, pad_len)  VMEM scratch: zero-padded flat tile (+ halo rows)
        # p_ref     : (K, THW)        VMEM scratch: im2col patches
        t = pl.program_id(1)

        # 1) Zero ONLY the two tiny slack regions a masked tap can read (<=127 lanes
        #    each); together with the halo/mid copies below this covers every lane the
        #    taps touch, so no whole-buffer zeroing and no ones row per step.
        xpad_ref[:, pl.ds(0, head_len)] = jnp.zeros((Cin, head_len), cdt)
        xpad_ref[:, pl.ds(tail_off, tail_len)] = jnp.zeros((Cin, tail_len), cdt)

        # 2) Halo rows: neighbor-tile rows, forced to zero at the image borders.
        top_flag = (t > 0).astype(cdt)
        bot_flag = (t < nT - 1).astype(cdt)
        xpad_ref[:, pl.ds(mid_off - W, W)] = x_top_ref[0, :, HALO - W:] * top_flag
        xpad_ref[:, pl.ds(mid_off + THW, W)] = x_bot_ref[0, :, :W] * bot_flag

        # 3) Tile body: one lane-aligned copy.
        xpad_ref[:, pl.ds(mid_off, THW)] = x_mid_ref[0]

        # 4) im2col: 9 flat lane-offset slices (lane rotations, no reshapes), with the
        #    row-wrap artifacts of the flat shift zeroed by the column masks.
        # TODO(synk): on v5e, apply the masks via pltpu.store(..., mask=...) (with a
        # one-time zero of the masked lanes) to keep bf16 multiplies off the VPU.
        # TODO(synk): split THW into ~512-lane sub-chunks and dot each chunk so tap
        # staging for chunk i+1 hides under the MXU of chunk i (currently this overlap
        # happens only at the grid-pipeline level between row tiles).
        lmask = m_ref[0:1, :]
        rmask = m_ref[1:2, :]
        for dh in range(3):
            for dw in range(3):
                tap = xpad_ref[:, pl.ds(LEAD + dh * W + dw, THW)]      # (Cin, THW)
                if dw == 0:
                    tap = tap * lmask
                elif dw == 2:
                    tap = tap * rmask
                t9 = dh * 3 + dw
                p_ref[t9 * Cin:(t9 + 1) * Cin, :] = tap

        # 5) One MXU contraction, f32 accumulation: (Cout,K) x (K,THW) -> (Cout,THW),
        #    then bias (VPU broadcast add) and PReLU.  PReLU before PixelShuffle is
        #    valid only because alpha is the single shared nn.PReLU() scalar.
        # TODO(synk): per-channel PReLU (num_parameters=C) would need alpha[cout // r^2].
        acc = jnp.dot(w_ref[...], p_ref[...],
                      preferred_element_type=jnp.float32, precision=dot_precision)
        acc = acc + b_ref[...]
        alpha_s = a_ref[0, 0]
        out = jnp.where(acc > 0, acc, alpha_s * acc)
        o_ref[...] = out.reshape(1, Cout, THW).astype(o_ref.dtype)

    # Explicit VMEM budget for the chosen tiles (double-buffered in/out + scratch),
    # so production-sized tiles compile on all generations without relying on the
    # 16/32 MiB scoped defaults.  Tiles themselves are sized for <= ~4096 lanes.
    itemsize = jnp.dtype(cdt).itemsize
    vmem_bytes = (
        2 * (Cin * THW + 2 * Cin * HALO + Cout * K + 2 * THW) * itemsize   # inputs x2
        + 2 * Cout * 4                                                      # bias x2
        + 2 * Cout * THW * jnp.dtype(inter_dt).itemsize                     # output x2
        + (Cin * pad_len + K * THW) * itemsize                              # scratch
    )
    vmem_limit = int(min(max(2 * vmem_bytes + (4 << 20), 32 << 20), 112 << 20))

    conv_flat = pl.pallas_call(
        kernel,
        out_shape=jax.ShapeDtypeStruct((N, Cout, HW), inter_dt),
        grid=(N, nT),
        in_specs=[
            pl.BlockSpec((1, Cin, THW), lambda n, t: (n, 0, t)),
            pl.BlockSpec((1, Cin, HALO),
                         lambda n, t: (n, 0, jnp.maximum(t * BH - 1, 0))),
            pl.BlockSpec((1, Cin, HALO),
                         lambda n, t: (n, 0, jnp.minimum((t + 1) * BH, NB - 1))),
            pl.BlockSpec((Cout, K), lambda n, t: (0, 0)),
            pl.BlockSpec((Cout, 1), lambda n, t: (0, 0)),
            pl.BlockSpec((2, THW), lambda n, t: (0, 0)),
            pl.BlockSpec(memory_space=pltpu.MemorySpace.SMEM),
        ],
        out_specs=pl.BlockSpec((1, Cout, THW), lambda n, t: (n, 0, t)),
        scratch_shapes=[
            pltpu.VMEM((Cin, pad_len), cdt),
            pltpu.VMEM((K, THW), cdt),
        ],
        compiler_params=pltpu.CompilerParams(
            dimension_semantics=("parallel", "parallel"),
            vmem_limit_bytes=vmem_limit),
    )(x_flat, x_flat, x_flat, w2, b2, masks, a2)

    # PixelShuffle: channel c*r^2 + i*r + j -> spatial (h*r+i, w*r+j), channel c.
    # The single remaining data-movement pass (one fused XLA reshape/transpose).
    # TODO(synk): fuse the r-way lane interleave into the kernel output (XLU roll /
    # bf16 bitcast-pack for r=2) to remove this extra HBM round trip of the largest
    # tensor; emitting the intermediate in bf16 (done above) already halves its bytes.
    out = conv_flat.reshape(N, C, r, r, H, W)
    out = jnp.transpose(out, (0, 1, 4, 2, 5, 3)).reshape(N, C, H * r, W * r)
    return out.astype(out_dt)


def _reference_forward(x_nchw, weight_oihw, bias, alpha, r):
    """Plain-JAX reference matching the PyTorch module exactly (NCHW)."""
    y = lax.conv_general_dilated(
        x_nchw, weight_oihw, window_strides=(1, 1), padding=((1, 1), (1, 1)),
        dimension_numbers=("NCHW", "OIHW", "NCHW"),
        precision=lax.Precision.HIGHEST)
    y = y + bias.reshape(1, -1, 1, 1)
    N, C_r2, H, W = y.shape
    C = C_r2 // (r * r)
    y = y.reshape(N, C, r, r, H, W).transpose(0, 1, 4, 2, 5, 3).reshape(N, C, H * r, W * r)
    return jnp.where(y > 0, y, alpha * y)


if __name__ == "__main__":
    # Small, deterministic config: channels=8, up_scale=2, batch=2, spatial=16.
    channels, up_scale = 8, 2
    N, H, W = 2, 16, 16
    Cout = channels * up_scale ** 2

    key = jax.random.PRNGKey(0)
    kx, kw, kb = jax.random.split(key, 3)
    x = jax.random.normal(kx, (N, channels, H, W), dtype=jnp.float32)
    weight = jax.random.normal(kw, (Cout, channels, 3, 3), dtype=jnp.float32) * 0.1
    bias = jax.random.normal(kb, (Cout,), dtype=jnp.float32) * 0.1
    alpha = jnp.float32(0.25)  # nn.PReLU() default init

    ref = _reference_forward(x, weight, bias, alpha, up_scale)

    # 1) f32 compute, 2 spatial row tiles (tile_h=8): exercises the halo/border logic
    #    and the tiled grid; tight check against the f32 reference.
    out_f32 = generator_upsample_block(x, weight, bias, alpha, up_scale=up_scale,
                                       compute_dtype=jnp.float32, tile_h=8)
    out_f32 = jax.block_until_ready(out_f32)
    assert out_f32.shape == (N, channels, H * up_scale, W * up_scale), out_f32.shape
    assert jnp.allclose(out_f32, ref, atol=1e-4, rtol=1e-4), (
        "f32 path mismatch vs reference, max abs err = %r"
        % float(jnp.max(jnp.abs(out_f32 - ref))))

    # 2) default bf16 compute path (production default): bf16-level tolerance.
    out_bf16 = generator_upsample_block(x, weight, bias, alpha, up_scale=up_scale,
                                        tile_h=8)
    out_bf16 = jax.block_until_ready(out_bf16)
    err_bf = float(jnp.max(jnp.abs(out_bf16.astype(jnp.float32) - ref)))
    assert err_bf < 1e-1, "bf16 path mismatch vs reference, max abs err = %r" % err_bf

    print("KERNEL_OK")
</pallas_src>

<mosaic_0001>
module attributes {stable_mosaic.version = 11 : i64} {
  func.func @kernel(%arg0: i32, %arg1: i32, %arg2: memref<1x8x128xf32, #tpu.memory_space<vmem>>, %arg3: memref<1x8x128xf32, #tpu.memory_space<vmem>>, %arg4: memref<1x8x128xf32, #tpu.memory_space<vmem>>, %arg5: memref<32x72xf32, #tpu.memory_space<vmem>>, %arg6: memref<32x1xf32, #tpu.memory_space<vmem>>, %arg7: memref<2x128xf32, #tpu.memory_space<vmem>>, %arg8: memref<1x1xf32, #tpu.memory_space<smem>>, %arg9: memref<1x32x128xf32, #tpu.memory_space<vmem>>, %arg10: memref<8x384xf32, #tpu.memory_space<vmem>>, %arg11: memref<72x128xf32, #tpu.memory_space<vmem>>) attributes {dimension_semantics = [#tpu.dimension_semantics<parallel>, #tpu.dimension_semantics<parallel>], iteration_bounds = array<i64: 2, 2>, scalar_prefetch = 0 : i64, scratch_operands = 2 : i64, tpu.core_type = #tpu.core_type<tc>, window_params = [{transform_indices = @transform_0, window_bounds = array<i64: 1, 8, 128>}, {transform_indices = @transform_1, window_bounds = array<i64: 1, 8, 128>}, {transform_indices = @transform_2, window_bounds = array<i64: 1, 8, 128>}, {pipeline_mode = #tpu.pipeline_mode<synchronous>, transform_indices = @transform_3, window_bounds = array<i64: 32, 72>}, {pipeline_mode = #tpu.pipeline_mode<synchronous>, transform_indices = @transform_4, window_bounds = array<i64: 32, 1>}, {pipeline_mode = #tpu.pipeline_mode<synchronous>, transform_indices = @transform_5, window_bounds = array<i64: 2, 128>}, {transform_indices = @transform_6, window_bounds = array<i64: 1, 1>}, {transform_indices = @transform_7, window_bounds = array<i64: 1, 32, 128>}]} {
    %cst = arith.constant 0.000000e+00 : f32
    %0 = vector.broadcast %cst : f32 to vector<8x112xf32>
    %c0 = arith.constant 0 : index
    %c0_0 = arith.constant 0 : index
    %1 = vector.load %arg10[%c0, %c0_0] : memref<8x384xf32, #tpu.memory_space<vmem>>, vector<8x112xf32>
    tpu.vector_store %arg10[%c0, %c0_0], %0 {strides = array<i32>} : memref<8x384xf32, #tpu.memory_space<vmem>>, vector<8x112xf32>,
    %cst_1 = arith.constant 0.000000e+00 : f32
    %2 = vector.broadcast %cst_1 : f32 to vector<8x112xf32>
    %c0_2 = arith.constant 0 : index
    %c272 = arith.constant 272 : index
    %3 = vector.load %arg10[%c0_2, %c272] : memref<8x384xf32, #tpu.memory_space<vmem>>, vector<8x112xf32>
    tpu.vector_store %arg10[%c0_2, %c272], %2 {strides = array<i32>} : memref<8x384xf32, #tpu.memory_space<vmem>>, vector<8x112xf32>,
    %c0_i32 = arith.constant 0 : i32
    %4 = arith.cmpi sgt, %arg1, %c0_i32 : i32
    %5 = arith.extui %4 : i1 to i32
    %6 = arith.sitofp %5 : i32 to f32
    %c1_i32 = arith.constant 1 : i32
    %7 = arith.cmpi slt, %arg1, %c1_i32 : i32
    %8 = arith.extui %7 : i1 to i32
    %9 = arith.sitofp %8 : i32 to f32
    %c0_3 = arith.constant 0 : index
    %c0_4 = arith.constant 0 : index
    %c112 = arith.constant 112 : index
    %10 = vector.load %arg3[%c0_3, %c0_4, %c112] : memref<1x8x128xf32, #tpu.memory_space<vmem>>, vector<1x8x16xf32>
    %11 = vector.shape_cast %10 : vector<1x8x16xf32> to vector<8x16xf32>
    %12 = vector.broadcast %6 : f32 to vector<8x16xf32>
    %13 = arith.mulf %11, %12 : vector<8x16xf32>
    %c0_5 = arith.constant 0 : index
    %c112_6 = arith.constant 112 : index
    %14 = vector.load %arg10[%c0_5, %c112_6] : memref<8x384xf32, #tpu.memory_space<vmem>>, vector<8x16xf32>
    tpu.vector_store %arg10[%c0_5, %c112_6], %13 {strides = array<i32>} : memref<8x384xf32, #tpu.memory_space<vmem>>, vector<8x16xf32>,
    %c0_7 = arith.constant 0 : index
    %c0_8 = arith.constant 0 : index
    %c0_9 = arith.constant 0 : index
    %15 = vector.load %arg4[%c0_7, %c0_8, %c0_9] : memref<1x8x128xf32, #tpu.memory_space<vmem>>, vector<1x8x16xf32>
    %16 = vector.shape_cast %15 : vector<1x8x16xf32> to vector<8x16xf32>
    %17 = vector.broadcast %9 : f32 to vector<8x16xf32>
    %18 = arith.mulf %16, %17 : vector<8x16xf32>
    %c0_10 = arith.constant 0 : index
    %c256 = arith.constant 256 : index
    %19 = vector.load %arg10[%c0_10, %c256] : memref<8x384xf32, #tpu.memory_space<vmem>>, vector<8x16xf32>
    tpu.vector_store %arg10[%c0_10, %c256], %18 {strides = array<i32>} : memref<8x384xf32, #tpu.memory_space<vmem>>, vector<8x16xf32>,
    %c0_11 = arith.constant 0 : index
    %c0_12 = arith.constant 0 : index
    %c0_13 = arith.constant 0 : index
    %20 = vector.load %arg2[%c0_11, %c0_12, %c0_13] : memref<1x8x128xf32, #tpu.memory_space<vmem>>, vector<1x8x128xf32>
    %21 = vector.shape_cast %20 : vector<1x8x128xf32> to vector<8x128xf32>
    %c0_14 = arith.constant 0 : index
    %c128 = arith.constant 128 : index
    %22 = vector.load %arg10[%c0_14, %c128] : memref<8x384xf32, #tpu.memory_space<vmem>>, vector<8x128xf32>
    tpu.vector_store %arg10[%c0_14, %c128], %21 {strides = array<i32>} : memref<8x384xf32, #tpu.memory_space<vmem>>, vector<8x128xf32>,
    %c0_15 = arith.constant 0 : index
    %c0_16 = arith.constant 0 : index
    %23 = vector.load %arg7[%c0_15, %c0_16] : memref<2x128xf32, #tpu.memory_space<vmem>>, vector<1x128xf32>
    %c1 = arith.constant 1 : index
    %c0_17 = arith.constant 0 : index
    %24 = vector.load %arg7[%c1, %c0_17] : memref<2x128xf32, #tpu.memory_space<vmem>>, vector<1x128xf32>
    %c0_18 = arith.constant 0 : index
    %c111 = arith.constant 111 : index
    %25 = vector.load %arg10[%c0_18, %c111] : memref<8x384xf32, #tpu.memory_space<vmem>>, vector<8x128xf32>
    %26 = vector.broadcast %23 : vector<1x128xf32> to vector<8x128xf32>
    %27 = arith.mulf %25, %26 : vector<8x128xf32>
    %c0_19 = arith.constant 0 : index
    %c0_20 = arith.constant 0 : index
    %28 = vector.load %arg11[%c0_19, %c0_20] : memref<72x128xf32, #tpu.memory_space<vmem>>, vector<8x128xf32>
    tpu.vector_store %arg11[%c0_19, %c0_20], %27 {strides = array<i32>} : memref<72x128xf32, #tpu.memory_space<vmem>>, vector<8x128xf32>,
    %c0_21 = arith.constant 0 : index
    %c112_22 = arith.constant 112 : index
    %29 = vector.load %arg10[%c0_21, %c112_22] : memref<8x384xf32, #tpu.memory_space<vmem>>, vector<8x128xf32>
    %c8 = arith.constant 8 : index
    %c0_23 = arith.constant 0 : index
    %30 = vector.load %arg11[%c8, %c0_23] : memref<72x128xf32, #tpu.memory_space<vmem>>, vector<8x128xf32>
    tpu.vector_store %arg11[%c8, %c0_23], %29 {strides = array<i32>} : memref<72x128xf32, #tpu.memory_space<vmem>>, vector<8x128xf32>,
    %c0_24 = arith.constant 0 : index
    %c113 = arith.constant 113 : index
    %31 = vector.load %arg10[%c0_24, %c113] : memref<8x384xf32, #tpu.memory_space<vmem>>, vector<8x128xf32>
    %32 = vector.broadcast %24 : vector<1x128xf32> to vector<8x128xf32>
    %33 = arith.mulf %31, %32 : vector<8x128xf32>
    %c16 = arith.constant 16 : index
    %c0_25 = arith.constant 0 : index
    %34 = vector.load %arg11[%c16, %c0_25] : memref<72x128xf32, #tpu.memory_space<vmem>>, vector<8x128xf32>
    tpu.vector_store %arg11[%c16, %c0_25], %33 {strides = array<i32>} : memref<72x128xf32, #tpu.memory_space<vmem>>, vector<8x128xf32>,
    %c0_26 = arith.constant 0 : index
    %c127 = arith.constant 127 : index
    %35 = vector.load %arg10[%c0_26, %c127] : memref<8x384xf32, #tpu.memory_space<vmem>>, vector<8x128xf32>
    %36 = vector.broadcast %23 : vector<1x128xf32> to vector<8x128xf32>
    %37 = arith.mulf %35, %36 : vector<8x128xf32>
    %c24 = arith.constant 24 : index
    %c0_27 = arith.constant 0 : index
    %38 = vector.load %arg11[%c24, %c0_27] : memref<72x128xf32, #tpu.memory_space<vmem>>, vector<8x128xf32>
    tpu.vector_store %arg11[%c24, %c0_27], %37 {strides = array<i32>} : memref<72x128xf32, #tpu.memory_space<vmem>>, vector<8x128xf32>,
    %c0_28 = arith.constant 0 : index
    %c128_29 = arith.constant 128 : index
    %39 = vector.load %arg10[%c0_28, %c128_29] : memref<8x384xf32, #tpu.memory_space<vmem>>, vector<8x128xf32>
    %c32 = arith.constant 32 : index
    %c0_30 = arith.constant 0 : index
    %40 = vector.load %arg11[%c32, %c0_30] : memref<72x128xf32, #tpu.memory_space<vmem>>, vector<8x128xf32>
    tpu.vector_store %arg11[%c32, %c0_30], %39 {strides = array<i32>} : memref<72x128xf32, #tpu.memory_space<vmem>>, vector<8x128xf32>,
    %c0_31 = arith.constant 0 : index
    %c129 = arith.constant 129 : index
    %41 = vector.load %arg10[%c0_31, %c129] : memref<8x384xf32, #tpu.memory_space<vmem>>, vector<8x128xf32>
    %42 = vector.broadcast %24 : vector<1x128xf32> to vector<8x128xf32>
    %43 = arith.mulf %41, %42 : vector<8x128xf32>
    %c40 = arith.constant 40 : index
    %c0_32 = arith.constant 0 : index
    %44 = vector.load %arg11[%c40, %c0_32] : memref<72x128xf32, #tpu.memory_space<vmem>>, vector<8x128xf32>
    tpu.vector_store %arg11[%c40, %c0_32], %43 {strides = array<i32>} : memref<72x128xf32, #tpu.memory_space<vmem>>, vector<8x128xf32>,
    %c0_33 = arith.constant 0 : index
    %c143 = arith.constant 143 : index
    %45 = vector.load %arg10[%c0_33, %c143] : memref<8x384xf32, #tpu.memory_space<vmem>>, vector<8x128xf32>
    %46 = vector.broadcast %23 : vector<1x128xf32> to vector<8x128xf32>
    %47 = arith.mulf %45, %46 : vector<8x128xf32>
    %c48 = arith.constant 48 : index
    %c0_34 = arith.constant 0 : index
    %48 = vector.load %arg11[%c48, %c0_34] : memref<72x128xf32, #tpu.memory_space<vmem>>, vector<8x128xf32>
    tpu.vector_store %arg11[%c48, %c0_34], %47 {strides = array<i32>} : memref<72x128xf32, #tpu.memory_space<vmem>>, vector<8x128xf32>,
    %c0_35 = arith.constant 0 : index
    %c144 = arith.constant 144 : index
    %49 = vector.load %arg10[%c0_35, %c144] : memref<8x384xf32, #tpu.memory_space<vmem>>, vector<8x128xf32>
    %c56 = arith.constant 56 : index
    %c0_36 = arith.constant 0 : index
    %50 = vector.load %arg11[%c56, %c0_36] : memref<72x128xf32, #tpu.memory_space<vmem>>, vector<8x128xf32>
    tpu.vector_store %arg11[%c56, %c0_36], %49 {strides = array<i32>} : memref<72x128xf32, #tpu.memory_space<vmem>>, vector<8x128xf32>,
    %c0_37 = arith.constant 0 : index
    %c145 = arith.constant 145 : index
    %51 = vector.load %arg10[%c0_37, %c145] : memref<8x384xf32, #tpu.memory_space<vmem>>, vector<8x128xf32>
    %52 = vector.broadcast %24 : vector<1x128xf32> to vector<8x128xf32>
    %53 = arith.mulf %51, %52 : vector<8x128xf32>
    %c64 = arith.constant 64 : index
    %c0_38 = arith.constant 0 : index
    %54 = vector.load %arg11[%c64, %c0_38] : memref<72x128xf32, #tpu.memory_space<vmem>>, vector<8x128xf32>
    tpu.vector_store %arg11[%c64, %c0_38], %53 {strides = array<i32>} : memref<72x128xf32, #tpu.memory_space<vmem>>, vector<8x128xf32>,
    %c0_39 = arith.constant 0 : index
    %c0_40 = arith.constant 0 : index
    %55 = vector.load %arg5[%c0_39, %c0_40] : memref<32x72xf32, #tpu.memory_space<vmem>>, vector<32x72xf32>
    %c0_41 = arith.constant 0 : index
    %c0_42 = arith.constant 0 : index
    %56 = vector.load %arg11[%c0_41, %c0_42] : memref<72x128xf32, #tpu.memory_space<vmem>>, vector<72x128xf32>
    %cst_43 = arith.constant dense<0.000000e+00> : vector<32x128xf32>
    %57 = tpu.matmul %55, %56, %cst_43 {dimension_numbers = #tpu.dot_dimension_numbers<[1], [0], [0], [1], [0, 0, 1, 1], [], []>} : vector<32x72xf32>, vector<72x128xf32>, vector<32x128xf32> -> vector<32x128xf32>
    %c0_44 = arith.constant 0 : index
    %c0_45 = arith.constant 0 : index
    %58 = vector.load %arg6[%c0_44, %c0_45] : memref<32x1xf32, #tpu.memory_space<vmem>>, vector<32x1xf32>
    %59 = vector.broadcast %58 : vector<32x1xf32> to vector<32x128xf32>
    %60 = arith.addf %57, %59 : vector<32x128xf32>
    %c0_46 = arith.constant 0 : index
    %c0_47 = arith.constant 0 : index
    %61 = memref.load %arg8[%c0_46, %c0_47] : memref<1x1xf32, #tpu.memory_space<smem>>
    %cst_48 = arith.constant 0.000000e+00 : f32
    %62 = vector.broadcast %cst_48 : f32 to vector<32x128xf32>
    %63 = arith.cmpf ogt, %60, %62 : vector<32x128xf32>
    %64 = vector.broadcast %61 : f32 to vector<32x128xf32>
    %65 = arith.mulf %64, %60 : vector<32x128xf32>
    %66 = arith.select %63, %60, %65 : vector<32x128xi1>, vector<32x128xf32>
    %67 = vector.shape_cast %66 : vector<32x128xf32> to vector<1x32x128xf32>
    %c0_49 = arith.constant 0 : index
    %c0_50 = arith.constant 0 : index
    %c0_51 = arith.constant 0 : index
    %68 = vector.load %arg9[%c0_49, %c0_50, %c0_51] : memref<1x32x128xf32, #tpu.memory_space<vmem>>, vector<1x32x128xf32>
    tpu.vector_store %arg9[%c0_49, %c0_50, %c0_51], %67 {strides = array<i32>} : memref<1x32x128xf32, #tpu.memory_space<vmem>>, vector<1x32x128xf32>,
    return
  }
  func.func @transform_0(%arg0: i32, %arg1: i32) -> (i32, i32, i32) {
    %c0_i32 = arith.constant 0 : i32
    %c0_i32_0 = arith.constant 0 : i32
    return %arg0, %c0_i32, %arg1 : i32, i32, i32
  }
  func.func @transform_1(%arg0: i32, %arg1: i32) -> (i32, i32, i32) {
    %c1_i32 = arith.constant 1 : i32
    %0 = arith.muli %arg1, %c1_i32 : i32
    %c1_i32_0 = arith.constant 1 : i32
    %1 = arith.subi %0, %c1_i32_0 : i32
    %c0_i32 = arith.constant 0 : i32
    %2 = arith.maxsi %1, %c0_i32 : i32
    %c0_i32_1 = arith.constant 0 : i32
    %c0_i32_2 = arith.constant 0 : i32
    return %arg0, %c0_i32_1, %2 : i32, i32, i32
  }
  func.func @transform_2(%arg0: i32, %arg1: i32) -> (i32, i32, i32) {
    %c1_i32 = arith.constant 1 : i32
    %0 = arith.addi %arg1, %c1_i32 : i32
    %c1_i32_0 = arith.constant 1 : i32
    %1 = arith.muli %0, %c1_i32_0 : i32
    %c1_i32_1 = arith.constant 1 : i32
    %2 = arith.minsi %1, %c1_i32_1 : i32
    %c0_i32 = arith.constant 0 : i32
    %c0_i32_2 = arith.constant 0 : i32
    return %arg0, %c0_i32, %2 : i32, i32, i32
  }
  func.func @transform_3(%arg0: i32, %arg1: i32) -> (i32, i32) {
    %c0_i32 = arith.constant 0 : i32
    %c0_i32_0 = arith.constant 0 : i32
    %c0_i32_1 = arith.constant 0 : i32
    return %c0_i32, %c0_i32_0 : i32, i32
  }
  func.func @transform_4(%arg0: i32, %arg1: i32) -> (i32, i32) {
    %c0_i32 = arith.constant 0 : i32
    %c0_i32_0 = arith.constant 0 : i32
    %c0_i32_1 = arith.constant 0 : i32
    return %c0_i32, %c0_i32_0 : i32, i32
  }
  func.func @transform_5(%arg0: i32, %arg1: i32) -> (i32, i32) {
    %c0_i32 = arith.constant 0 : i32
    %c0_i32_0 = arith.constant 0 : i32
    %c0_i32_1 = arith.constant 0 : i32
    return %c0_i32, %c0_i32_0 : i32, i32
  }
  func.func @transform_6(%arg0: i32, %arg1: i32) -> (i32, i32) {
    %c0_i32 = arith.constant 0 : i32
    %c0_i32_0 = arith.constant 0 : i32
    %c0_i32_1 = arith.constant 0 : i32
    return %c0_i32, %c0_i32_0 : i32, i32
  }
  func.func @transform_7(%arg0: i32, %arg1: i32) -> (i32, i32, i32) {
    %c0_i32 = arith.constant 0 : i32
    %c0_i32_0 = arith.constant 0 : i32
    return %arg0, %c0_i32, %arg1 : i32, i32, i32
  }
}

</mosaic_0001>

<bundles_post_ra>
// kernel: tpu_custom_call.1
= control target key start
LH: loop header
LB: loop body
LE: loop exit
PB: predicated region body
PF: predicated region fallthrough
CT: control target
= control target key end

     0   :  { %s1932_s0 = inlined_call_operand.vmem [shape: f32[2,8,256], index: 0, kind: input, shape index: {}]   ;;  %s1933_s1 = inlined_call_operand.hbm [shape: f32[2,8,256], index: 1, kind: input, shape index: {}]   ;;  %s1934_s2 = inlined_call_operand.hbm [shape: f32[2,8,256], index: 2, kind: input, shape index: {}]   ;;  %s1935_s3 = inlined_call_operand.hbm [shape: f32[32,72], index: 3, kind: input, shape index: {}]   ;;  %s1936_s4 = inlined_call_operand.vmem [shape: f32[32,1], index: 4, kind: input, shape index: {}]   ;;  %s1937_s5 = inlined_call_operand.vmem [shape: f32[2,128], index: 5, kind: input, shape index: {}]   ;;  %s1938_s6 = inlined_call_operand.<no memory space> [shape: f32[1,1], index: 6, kind: input, shape index: {}]   ;;  %s1939_s7 = inlined_call_operand.hbm [shape: f32[2,32,256], index: 7, kind: output, shape index: {}]  }
   0x1   :  { %1961 = sst [smem:[#allocation22_spill]] %s1932_s0 }
   0x2   :  { %1962 = sst [smem:[#allocation23_spill]] %s1933_s1 }
   0x3   :  { %1963 = sst [smem:[#allocation24_spill]] %s1934_s2 }
   0x4   :  { %1964 = sst [smem:[#allocation25_spill]] %s1935_s3 }
   0x5   :  { %1965 = sst [smem:[#allocation26_spill]] %s1936_s4 }
   0x6   :  { %1966 = sst [smem:[#allocation27_spill]] %s1937_s5 }
   0x7   :  { %1967 = sst [smem:[#allocation28_spill]] %s1939_s7 }
   0x8   :  { %12 = sst [smem:[#allocation4]] %s1938_s6 }
   0x9   :  { %13 = vsyncpa [#allocation6], 0 }
   0xa   :  { %15 = vsyncpa [#allocation6 + $0x1], 0 }
   0xb   :  { %16 = vsyncpa [#allocation9], 0 }
   0xc   :  { %18 = vsyncpa [#allocation9 + $0x1], 0 }
   0xd   :  { %19 = vsyncpa [#allocation7], 0 }
   0xe   :  { %21 = vsyncpa [#allocation7 + $0x1], 0  ;;  %s1490_s26 = smov 0   ;;  %s1492_s27 = smov 0  }
   0xf   :  { %s1494_s28 = smov 0   ;;  %s1496_s29 = smov 0  }
  0x10   :  { %s1498_s30 = smov 0   ;;  %s1500_s8 = smov 0  }
  0x11   :  { %s1502_s9 = smov 0   ;;  %s1504_s6 = smov 0  }
  0x12   :  { %s1506_s10 = smov 0   ;;  %s1508_s11 = smov 0  }
  0x13   :  { %s1510_s12 = smov 0   ;;  %s1512_s13 = smov 0  }
  0x14   :  { %s1514_s14 = smov 0   ;;  %s1516_s15 = smov 0  }
  0x15 LB: > { %1968 = sst [smem:[#allocation16_spill]] %s1374_s26  ;;  %s1561_s16 = sadd.s32 4294967295, %s1426_s15   ;;  %s1426_s15 = sphi %s1516_s15, %s27_s15   ;;  %s1422_s14 = sphi %s1514_s14, %s2029_s14   ;;  %s1418_s13 = sphi %s1512_s13, %s2028_s13   ;;  %s1414_s12 = sphi %s1510_s12, %s2027_s12   ;;  %s1410_s11 = sphi %s1508_s11, %s2026_s11   ;;  %s1406_s10 = sphi %s1506_s10, %s2025_s10   ;;  %s1402_s6 = sphi %s1504_s6, %s2024_s6   ;;  %s1398_s9 = sphi %s1502_s9, %s2023_s9   ;;  %s1394_s8 = sphi %s1500_s8, %s2022_s8   ;;  %s1390_s30 = sphi %s1498_s30, %s2021_s30   ;;  %s1386_s29 = sphi %s1496_s29, %s2020_s29   ;;  %s1382_s28 = sphi %s1494_s28, %s2019_s28   ;;  %s1378_s27 = sphi %s1492_s27, %s2018_s27   ;;  %s1374_s26 = sphi %s1490_s26, %s2017_s26  }
  0x16   : > { %1969 = sst [smem:[#allocation17_spill]] %s1378_s27  ;;  %s892_s17 = sadd.s32 4294967294, %s1426_s15  }
  0x17   : > { %1970 = sst [smem:[#allocation18_spill]] %s1410_s11  ;;  %p1945_p0 = scmp.eq.s32.totalorder %s1561_s16, 0 }
  0x18   : > { %p238_p1 = scmp.ne.s32.totalorder %s1382_s28, %s1378_s27  ;;  %p239_p2 = scmp.eq.s32.totalorder %s1561_s16, 3 }
  0x19   : > { %p244_p3 = scmp.ne.s32.totalorder %s1378_s27, %s1374_s26  ;;  %p245_p4 = scmp.eq.s32.totalorder %s892_s17, 3 }
  0x1a   : > { %p895_p5 = scmp.ge.s32.totalorder %s1426_s15, 1  ;;  %p1571_p6 = por %p239_p2, %p238_p1 }
  0x1b   : > { %p252_p7 = scmp.lt.s32.totalorder %s1426_s15, 5  ;;  %p1576_p8 = por %p245_p4, %p244_p3 }
  0x1c   : > { %s1971_s18 = scalar_select %p1571_p6, 1, 0 }
  0x1d   : > { %s1973_s19 = scalar_select %p1576_p8, 1, 0 }
  0x1e   : > { %1972 = sst [smem:[#allocation19_spill]] %s1971_s18  ;;  %p1580_p9 = pnand %p895_p5, %p252_p7 }
  0x1f   : > { %1974 = sst [smem:[#allocation20_spill]] %s1973_s19  ;;  %s1428_s21 = smov [#allocation10]  }
  0x20   : > { %s1975_s20 = scalar_select %p1580_p9, 1, 0 }
  0x21   : > { %s264_s22 = sshll.u32 %s1428_s21, 4  ;;  %p996_p10 = pneg %p1580_p9  ;;  %s265_s22 = int_to_ptr.vmem [resolvable:$true] %s264_s22 }
  0x22   : > { %s1977_s3 = sld [smem:[#allocation25_spill]] }
  0x23   : > { %p1588_p11 = pnand %p996_p10, %p1945_p0 }
  0x25   : > { %p1182_p13 = pneg %p1588_p11 }
  0x28   : > { %s1180_s17 = scalar_lea.hbm %s1977_s3, 512 }
  0x29   : > { %p1181_p12 = scmp.ne.s32.totalorder %s1977_s3, %s1180_s17  ;;  %p1187_p3 = scmp.lt.u32.totalorder %s1180_s17, %s1977_s3 }
  0x2b   : > { %p1183_p1 = pnand %p1182_p13, %p1181_p12 }
  0x2d   : > { %p1184_p2 = pneg %p1183_p1 }
  0x2f   : > { %p1189_p4 = pnand %p1187_p3, %p1184_p2 }
  0x31   : > { %1192 = shalt.err (!%p1189_p4)
}
  0x32   : > { %s1193_s18 = scalar_lea.vmem %s265_s22, 512  ;;  %p1201_p0 = scmp.lt.s32.totalorder %s265_s22, %s265_s22 }
  0x33   : > { %p1194_p5 = scmp.ne.s32.totalorder %s265_s22, %s1193_s18  ;;  %p1202_p8 = scmp.lt.s32.totalorder %s1193_s18, %s1193_s18 }
  0x35   : > { %p1196_p7 = pnand %p1194_p5, %p1182_p13  ;;  %p1203_p6 = por %p1202_p8, %p1201_p0 }
  0x37   : > { %p1197_p10 = pneg %p1196_p7 }
  0x39   : > { %p1204_p9 = pnand %p1203_p6, %p1197_p10 }
  0x3b   : > { %1207 = shalt.err (!%p1204_p9)
}
  0x3c   : > { %s1429_s26 = smov 128   ;;  %s1430_s7 = smov 8  }
  0x3d   : > { %999 = dma.hbm_to_vmem [thread:$0]  (!%p1588_p11), %s1977_s3, 512, %s265_s22, [#allocation9], %s1429_s26, %s1429_s26, %s1430_s7  }
  0x3e   : > { %s36_s24 = sadd.s32 1, %s1418_s13  ;;  %s39_s25 = sadd.s32 1, %s1422_s14 }
  0x3f   : > { %p37_p0 = scmp.ge.s32.totalorder %s36_s24, 2  ;;  %s82_s17 = sadd.s32 1, %s1406_s10 }
  0x40   : > { %p89_p8 = scmp.ne.s32.totalorder %s1406_s10, %s1402_s6  ;;  %p1955_p9 = scmp.eq.s32.totalorder %s1426_s15, 0 }
  0x41   : > { %s2031_s24 = smov (%p37_p0, %s36_s24), 0  ;;  %s2033_s25 = smov (!%p37_p0, %s39_s25), %s1422_s14 }
  0x42   : > { %p41_p6 = scmp.ge.s32.totalorder %s2033_s25, 2  ;;  %p95_p11 = scmp.ne.s32.totalorder %s1402_s6, %s1398_s9 }
  0x43   : > { %p1627_p12 = por %p1955_p9, %p89_p8  ;;  %p1980_p1 = scmp.eq.s32.totalorder %s1561_s16, 0 }
  0x44   : > { %s2035_s25 = smov (%p41_p6, %s2033_s25), 0  ;;  %s224_s7 = ssub.s32 %s1418_s13, %s2031_s24 }
  0x45   : > { %1978 = sst [smem:[#allocation21_spill]] %s2035_s25  ;;  %s1620_s22 = ssub.s32 %s1422_s14, %s2035_s25 }
  0x46   : > { %p1956_p13 = scmp.eq.s32.totalorder %s1620_s22, 0  ;;  %p1634_p2 = por %p1980_p1, %p95_p11 }
  0x47   : > { %s225_s19 = sor.u32 %s224_s7, %s1620_s22  ;;  %s228_s9 = sadd.s32 1, %s1382_s28 }
  0x48   : > { %s1641_s26 = scalar_select %p1956_p13, %s1406_s10, %s82_s17  }
  0x49   : > { %p226_p3 = scmp.eq.s32.totalorder %s225_s19, 0  ;;  %p1954_p4 = scmp.lt.s32.totalorder %s1426_s15, 4 }
  0x4a   : > { %s298_s18 = sand.u32 1, %s1406_s10   ;;  %s1368_s0 = sshll.u32 %s1422_s14, 8 }
  0x4b   : > { %s898_s3 = sshll.u32 %s298_s18, 3  ;;  %s1982_s1 = sld [smem:[#allocation23_spill]] }
  0x4c   : > { %s1650_s25 = scalar_select %p226_p3, %s1382_s28, %s228_s9  }
  0x4d   : > { %s302_s27 = scalar_lea.vmem [#allocation5], %s898_s3  ;;  %p1666_p5 = pnand %p1954_p4, %p1627_p12 }
  0x4e   : > { %s314_s4 = sshll.u32 %s302_s27, 4  ;;  %s299_s3 = scalar_lea.sflag [#allocation6], %s298_s18  ;;  %s1653_s4 = int_to_ptr.vmem [resolvable:$true] %s314_s4 }
  0x4f   : > { %p1210_p10 = pneg %p1666_p5 }
  0x51   : > { %s1660_s17 = scalar_lea.hbm %s1982_s1, %s1368_s0  ;;  %s1213_s23 = scalar_lea.hbm %s1982_s1, 512 }
  0x52   : > { %s1208_s27 = scalar_lea.hbm %s1660_s17, 128  ;;  %p1214_p8 = scmp.lt.u32.totalorder %s1660_s17, %s1982_s1 }
  0x53   : > { %p1209_p7 = scmp.ne.s32.totalorder %s1660_s17, %s1208_s27  ;;  %p1215_p11 = scmp.lt.u32.totalorder %s1213_s23, %s1208_s27 }
  0x54   : > { %p1217_p1 = scmp.lt.u32.totalorder %s1208_s27, %s1660_s17 }
  0x55   : > { %p1211_p0 = pnand %p1210_p10, %p1209_p7  ;;  %p1216_p12 = por %p1215_p11, %p1214_p8 }
  0x57   : > { %p1212_p6 = pneg %p1211_p0  ;;  %p1218_p3 = por %p1217_p1, %p1216_p12 }
  0x59   : > { %p1219_p4 = pnand %p1218_p3, %p1212_p6 }
  0x5b   : > { %1222 = shalt.err (!%p1219_p4)
}
  0x5c   : > { %s1223_s18 = scalar_lea.vmem %s1653_s4, 128  ;;  %s1431_s5 = smov [#allocation5]  }
  0x5d   : > { %p1224_p7 = scmp.ne.s32.totalorder %s1653_s4, %s1223_s18  ;;  %s1228_s11 = sshll.u32 %s1431_s5, 4  ;;  %s1229_s11 = int_to_ptr.vmem [resolvable:$false] %s1228_s11 }
  0x5e   : > { %s1230_s19 = scalar_lea.vmem %s1229_s11, 256  ;;  %p1231_p13 = scmp.lt.s32.totalorder %s1653_s4, %s1229_s11 }
  0x5f   : > { %p1226_p0 = pnand %p1224_p7, %p1210_p10  ;;  %p1232_p8 = scmp.lt.s32.totalorder %s1230_s19, %s1223_s18 }
  0x61   : > { %p1227_p9 = pneg %p1226_p0  ;;  %p1233_p11 = por %p1232_p8, %p1231_p13 }
  0x63   : > { %p1234_p12 = pnand %p1233_p11, %p1227_p9 }
  0x65   : > { %1237 = shalt.err (!%p1234_p12)
}
  0x66   : > { %1003 = dma.hbm_to_vmem [thread:$0]  (!%p1666_p5), %s1660_s17, 128, %s1653_s4, %s299_s3  }
  0x67   : > { %s116_s27 = sadd.s32 1, %s1394_s8  ;;  %p123_p9 = scmp.ne.s32.totalorder %s1394_s8, %s1390_s30 }
  0x68   : > { %p1984_p13 = scmp.eq.s32.totalorder %s1620_s22, 0  ;;  %p1985_p4 = scmp.eq.s32.totalorder %s1426_s15, 0 }
  0x69   : > { %p129_p6 = scmp.ne.s32.totalorder %s1390_s30, %s1386_s29  ;;  %s321_s23 = sand.u32 1, %s1426_s15  }
  0x6a   : > { %s1701_s7 = scalar_select %p1984_p13, %s1394_s8, %s116_s27  }
  0x6b   : > { %p125_p10 = por %p123_p9, %p1985_p4  ;;  %s323_s9 = sand.u32 1, %s1394_s8  }
  0x6c   : > { %p1986_p1 = scmp.eq.s32.totalorder %s1561_s16, 0  ;;  %s902_s5 = sshll.u32 %s323_s9, 3 }
  0x6d   : > { %s1370_s11 = sadd.s32 128, %s1368_s0  ;;  %s1988_s2 = sld [smem:[#allocation24_spill]] }
  0x6e   : > { %p1711_p3 = por %p129_p6, %p1986_p1  ;;  %s325_s29 = scalar_lea.vmem [#allocation8], %s902_s5 }
  0x6f   : > { %s337_s22 = sshll.u32 %s325_s29, 4  ;;  %p1989_p5 = scmp.lt.s32.totalorder %s1426_s15, 4  ;;  %s1728_s22 = int_to_ptr.vmem [resolvable:$true] %s337_s22 }
  0x70   : > { %s1987_s18 = scalar_select %p1711_p3, 1, 0 }
  0x71   : > { %p1724_p7 = pnand %p1989_p5, %p125_p10  ;;  %s322_s0 = scalar_lea.sflag [#allocation9], %s321_s23 }
  0x73   : > { %s1720_s17 = scalar_lea.hbm %s1988_s2, %s1370_s11  ;;  %p1240_p8 = pneg %p1724_p7 }
  0x74   : > { %s1238_s27 = scalar_lea.hbm %s1720_s17, 128  ;;  %s1243_s11 = scalar_lea.hbm %s1988_s2, 512 }
  0x75   : > { %p1239_p0 = scmp.ne.s32.totalorder %s1720_s17, %s1238_s27  ;;  %p1244_p9 = scmp.lt.u32.totalorder %s1720_s17, %s1988_s2 }
  0x76   : > { %p1245_p13 = scmp.lt.u32.totalorder %s1243_s11, %s1238_s27  ;;  %p1247_p10 = scmp.lt.u32.totalorder %s1238_s27, %s1720_s17 }
  0x77   : > { %p1241_p11 = pnand %p1240_p8, %p1239_p0 }
  0x78   : > { %p1246_p4 = por %p1245_p13, %p1244_p9 }
  0x79   : > { %p1242_p12 = pneg %p1241_p11 }
  0x7a   : > { %p1248_p6 = por %p1247_p10, %p1246_p4 }
  0x7c   : > { %p1249_p1 = pnand %p1248_p6, %p1242_p12 }
  0x7e   : > { %1252 = shalt.err (!%p1249_p1)
}
  0x7f   : > { %s1253_s23 = scalar_lea.vmem %s1728_s22, 128  ;;  %s1432_s29 = smov [#allocation8]  }
  0x80   : > { %p1254_p5 = scmp.ne.s32.totalorder %s1728_s22, %s1253_s23  ;;  %s1258_s9 = sshll.u32 %s1432_s29, 4  ;;  %s1259_s9 = int_to_ptr.vmem [resolvable:$false] %s1258_s9 }
  0x81   : > { %s1260_s5 = scalar_lea.vmem %s1259_s9, 256  ;;  %p1261_p3 = scmp.lt.s32.totalorder %s1728_s22, %s1259_s9 }
  0x82   : > { %p1256_p0 = pnand %p1254_p5, %p1240_p8  ;;  %p1262_p9 = scmp.lt.s32.totalorder %s1260_s5, %s1253_s23 }
  0x84   : > { %p1257_p11 = pneg %p1256_p0  ;;  %p1263_p13 = por %p1262_p9, %p1261_p3 }
  0x86   : > { %p1264_p4 = pnand %p1263_p13, %p1257_p11 }
  0x88   : > { %1267 = shalt.err (!%p1264_p4)
}
  0x89   : > { %1006 = dma.hbm_to_vmem [thread:$0]  (!%p1724_p7), %s1720_s17, 128, %s1728_s22, %s322_s0  }
  0x8a   : > { %p1991_p12 = scmp.ne.s32.totalorder %s1975_s20, 0 }
  0x8b   : > { %s348_s27 = sand.u32 (!%p1991_p12), 1, %s1402_s6  }
  0x8c   : > { %346 = sbr.rel (%p1991_p12) target bundleno = 655 (0x28f), region = 48  ;;  %s1758_s11 = sshll.u32 (!%p1991_p12), %s348_s27, 3 }
  0x8d   : > { %s349_s19 = scalar_lea.sflag (!%p1991_p12), [#allocation6], %s348_s27 }
  0x93   : > { %1353 = dma.done.wait (%p1634_p2), %s349_s19, 128  }
  0x94   : > { %1355 = vsyncadd (%p1634_p2), %s349_s19, 4294967168  ;;  %s357_s17 = sand.u32 1, %s1561_s16   ;;  %s359_s22 = sand.u32 1, %s1390_s30  }
  0x95   : > { %s1767_s20 = sshll.u32 %s359_s22, 3  ;;  %s358_s3 = scalar_lea.sflag [#allocation9], %s357_s17 }
  0x96   : > { %p1992_p3 = scmp.ne.s32.totalorder %s1987_s18, 0 }
  0x98   : > { %1357 = dma.done.wait (%p1992_p3), %s358_s3, 128  }
  0x99   : > { %1359 = vsyncadd (%p1992_p3), %s358_s3, 4294967168  ;;  %p1993_p7 = scmp.eq.s32.totalorder %s1561_s16, 0 }
  0x9b   : > { %1361 = dma.done.wait (%p1993_p7), [#allocation9], 512   ;;  %p1994_p2 = pmov %p1993_p7 }
  0x9c   : > { %s1995_s21 = sld [smem:[#allocation18_spill]]  ;;  %vm423_vm0 = vcmask 916480   ;;  %v1433_v0 = vmov 0.0   ;;  %vm425_vm1 = vcmask 1047680   ;;  %p409_p8 = scmp.lt.s32.totalorder %s1414_s12, 1  ;;  %vm436_vm2 = vcmask 1048448  }
  0x9d   : > { %1363 = vsyncadd (%p1994_p2), [#allocation9], 4294966784  ;;  %424 = vst.msk [vmem:[#allocation2] sm:$0xff] %vm423_vm0, %v1433_v0  ;;  %s1996_s9 = sld [smem:[#allocation27_spill]]  ;;  %s1958_s19 = smov 111   ;;  %vm441_vm3 = vcmask 130048  }
  0x9e   : > { %426 = vst.msk [vmem:[#allocation2 + $0x10] sm:$0xff] %vm425_vm1, %v1433_v0  ;;  %s410_s18 = scalar_select %p409_p8, %s1414_s12, 1  ;;  %v583_v36 = vld [vmem:[#allocation10] sm:$0xff]  ;;  %vm620_vm4 = vcmask 588800   ;;  %v585_v37 = vld [vmem:[#allocation10 + $0x10] sm:$0xff]  ;;  %v1441_v38 = vmov 0  }
  0x9f   : > { %s1960_s17 = smov 127   ;;  %s1998_s16 = sld [smem:[#allocation22_spill]]  ;;  %954 = vmatprep.mubr.msk.f32.mxu0 %vm620_vm4, %v583_v36  ;;  %957 = vmatprep.mubr.msk.f32.mxu1 %vm620_vm4, %v585_v37  ;;  %vm465_vm5 = vcmask 138240   ;;  %vm515_vm6 = vcmask 7168   ;;  %vm498_vm7 = vcmask 121856   ;;  %vm534_vm8 = vcmask 1039360  }
  0xa0   : > { %s910_s27 = sshll.u32 %s410_s18, 1  ;;  %s1436_s2 = smov 113   ;;  %1178 = vset.pattern.permute.xlu1 %v1441_v38  ;;  %1179 = vset.pattern.permute.xlu0 %v1441_v38  ;;  %vm551_vm9 = vcmask 924672   ;;  %vm579_vm10 = vcmask 908288  }
  0xa1   : > { %s1438_s1 = smov 15   ;;  %s2003_s29 = sld [smem:[#allocation26_spill]] }
  0xa2   : > { %p411_p10 = scmp.lt.s32.totalorder %s1995_s21, 1  ;;  %p427_p6 = scmp.gt.s32.totalorder %s1995_s21, 0 }
  0xa3   : > { %s1997_s5 = smov %s1996_s9  ;;  %v912_v1 = vld [vmem:[%s1996_s9] ss:$0 sm:$0xff] }
  0xa4   : > { %s412_s23 = scalar_select %p411_p10, %s1995_s21, 1  ;;  %454 = vrot.lane.b32.xlu0 %v912_v1, %s1958_s19  ;;  %504 = vrot.lane.b32.xlu1 %v912_v1, %s1960_s17  ;;  %v913_v2 = vld [vmem:[%s1997_s5 + $0x1] ss:$0 sm:$0xff] }
  0xa5   : > { %s428_s9 = scalar_select %p427_p6, 1, 0 }
  0xa6   : > { %s414_s22 = sadd.s32 %s910_s27, %s412_s23  ;;  %s1437_s19 = smov 1  }
  0xa7   : > { %s911_s4 = sshll.u32 %s414_s22, 3  ;;  %s429_s27 = scvt.s32.f32 %s428_s9  ;;  %v596_v40 = vld [vmem:[%s2003_s29] sm:$0xff] }
  0xa8   : > { %s416_s18 = scalar_lea.vmem %s1998_s16, %s911_s4  ;;  %487 = vrot.lane.b32.xlu0 %v913_v2, %s1436_s2  ;;  %523 = vrot.lane.b32.xlu1 %v913_v2, %s1437_s19  ;;  %s1999_s17 = scalar_lea.vmem [#allocation5], %s1758_s11 }
  0xa9   : > { %v1797_v3 = vld [vmem:[%s416_s18] sm:$0xff]  ;;  %s431_s23 = scalar_select %p411_p10, 1, 0  ;;  %v434_v6 = vstv %s429_s27 }
  0xaa   : > { %v433_v4 = vld [vmem:[%s1999_s17] sm:$0xff]  ;;  %s2000_s22 = scalar_lea.vmem [#allocation8], %s1767_s20  ;;  %s1439_s4 = smov 17  }
  0xab   : > { %s432_s0 = scvt.s32.f32 %s431_s23  ;;  %v438_v5 = vld [vmem:[%s2000_s22] sm:$0xff]  ;;  %v435_v7 = vmul.f32 %v434_v6, %v433_v4  ;;  %s1440_s11 = smov 16  }
  0xac   : > { %540 = vrot.lane.b32.xlu0 %v912_v1, %s1438_s1  ;;  %568 = vrot.lane.b32.xlu1 %v913_v2, %s1439_s4  ;;  %s2001_s20 = smov 127   ;;  %s2002_s17 = smov 111  }
  0xad   : > { %v439_v8 = vstv %s432_s0  ;;  %437 = vst.msk [vmem:[#allocation2] sm:$0xff] %vm436_vm2, %v435_v7  ;;  %s2004_s16 = smov %s2003_s29  ;;  %s2007_s9 = sld [smem:[#allocation28_spill]] }
  0xae   : > { %v440_v9 = vmul.f32 %v439_v8, %v438_v5  ;;  %v598_v41 = vld [vmem:[%s2004_s16 + $0x10] sm:$0xff]  ;;  %v597_v42 = vld [vmem:[%s2004_s16 + $0x8] sm:$0xff]  ;;  %v599_v43 = vld [vmem:[%s2004_s16 + $0x18] sm:$0xff] }
  0xb0   : > { %442 = vst.msk [vmem:[#allocation2 + $0x10] sm:$0xff] %vm441_vm3, %v440_v9 }
  0xb3   : > { %s2008_s23 = smov %s2007_s9 }
  0xb4   : > { %v447_v10 = vld [vmem:[#allocation2] sm:$0xff] }
  0xb5   : > { %v1143_v11 = vpack.i.bf16 %v1797_v3, %v447_v10 }
  0xb7   : > { %1144 = vrot.lane.b32.xlu1 %v1143_v11, %s1440_s11  ;;  %v522_v18 = vld [vmem:[#allocation2 + $0x10] sm:$0xff]  ;;  %s718_s11 = sld [smem:[#allocation4]] }
  0xb8   : > { %v1173_v34 = vpack.i.bf16 %v522_v18, %v1797_v3 }
 0x116   : > { %v455_v12 = vpop.permute.xlu0 %454  ;;  %v505_v13 = vpop.permute.xlu1 %504 }
 0x117   : > { %v457_v14 = vmul.f32 %v455_v12, %v447_v10  ;;  %v458_v15 = vmul.f32 %v455_v12, %v1797_v3  ;;  %v507_v16 = vmul.f32 %v505_v13, %v447_v10  ;;  %v508_v17 = vmul.f32 %v505_v13, %v1797_v3 }
 0x119   : > { %v1148_v19 = vpack.i.bf16 %v458_v15, %v457_v14  ;;  %v1158_v20 = vpack.i.bf16 %v508_v17, %v507_v16  ;;  %v586_v16 = vld [vmem:[#allocation10 + $0x18] sm:$0xff] }
 0x11a   : > { %v488_v21 = vpop.permute.xlu0 %487  ;;  %v524_v22 = vpop.permute.xlu1 %523 }
 0x11b   : > { %v490_v23 = vmul.f32 %v488_v21, %v447_v10  ;;  %v491_v24 = vmul.f32 %v488_v21, %v1797_v3  ;;  %1149 = vrot.lane.b32.xlu0 %v1148_v19, %s1439_s4  ;;  %v526_v25 = vmul.f32 %v524_v22, %v1797_v3  ;;  %v527_v26 = vmul.f32 %v524_v22, %v522_v18 }
 0x11c   : > { %1159 = vrot.lane.b32.xlu1 %v1158_v20, %s1437_s19  ;;  %s1442_s19 = smov 112   ;;  %v723_v22 = vstv %s718_s11  ;;  %s1443_s11 = smov [#allocation11]  }
 0x11d   : > { %v1153_v27 = vpack.i.bf16 %v491_v24, %v490_v23  ;;  %v1163_v29 = vpack.i.bf16 %v527_v26, %v526_v25 }
 0x11e   : > { %v541_v28 = vpop.permute.xlu0 %540  ;;  %v569_v32 = vpop.permute.xlu1 %568 }
 0x11f   : > { %1154 = vrot.lane.b32.xlu0 %v1153_v27, %s1438_s1  ;;  %v543_v30 = vmul.f32 %v541_v28, %v1797_v3  ;;  %v544_v31 = vmul.f32 %v541_v28, %v522_v18  ;;  %v571_v35 = vmul.f32 %v569_v32, %v1797_v3  ;;  %v572_v39 = vmul.f32 %v569_v32, %v522_v18  ;;  %s2005_s1 = sld [smem:[#allocation17_spill]] }
 0x121   : > { %v1168_v33 = vpack.i.bf16 %v544_v31, %v543_v30 }
 0x123   : > { %1164 = vrot.lane.b32.xlu0 %v1163_v29, %s2001_s20  ;;  %1169 = vrot.lane.b32.xlu1 %v1168_v33, %s1436_s2 }
 0x125   : > { %s406_s4 = sand.u32 1, %s2005_s1  }
 0x126   : > { %s909_s20 = sshll.u32 %s406_s4, 5  ;;  %s1856_s0 = scalar_lea.sflag [#allocation7], %s406_s4 }
 0x127   : > { %1174 = vrot.lane.b32.xlu0 %v1173_v34, %s1442_s19  ;;  %575 = vrot.lane.b32.xlu1 %v571_v35, %s2002_s17  ;;  %s919_s19 = sshll.u32 %s1414_s12, 3  ;;  %s408_s2 = scalar_lea.vmem [#allocation11], %s909_s20 }
 0x128   : > { %s751_s3 = sshll.u32 %s408_s2, 4  ;;  %s2006_s12 = sld [smem:[#allocation19_spill]]  ;;  %s1847_s3 = int_to_ptr.vmem [resolvable:$true] %s751_s3 }
 0x129   : > { %v1145_v44 = vpop.permute.xlu1 %1144  ;;  %s1268_s22 = scalar_lea.vmem %s1847_s3, 512  ;;  %s1272_s20 = sshll.u32 %s1443_s11, 4  ;;  %s1273_s20 = int_to_ptr.vmem [resolvable:$false] %s1272_s20 }
 0x12a   : > { %v1147_v45 = vunpack.i.h.bf16 %v1145_v44  ;;  %v1146_v46 = vunpack.i.l.bf16 %v1145_v44  ;;  %p1269_p1 = scmp.ne.s32.totalorder %s1847_s3, %s1268_s22  ;;  %p1275_p9 = scmp.lt.s32.totalorder %s1847_s3, %s1273_s20 }
 0x12b   : > { %577 = vrot.lane.b32.xlu0 %v572_v39, %s2002_s17  ;;  %602 = vperm.xlu1 %1178, %v596_v40   ;;  %s748_s17 = sadd.s32 %s1995_s21, %s919_s19  ;;  %s1274_s19 = scalar_lea.vmem %s1273_s20, 1024 }
 0x12c   : > { %v477_v48 = vsel %vm441_vm3, %v1146_v46, %v1147_v45  ;;  %s920_s29 = sshll.u32 %s748_s17, 7  ;;  %p1276_p13 = scmp.lt.s32.totalorder %s1274_s19, %s1268_s22 }
 0x12d   : > { %s1852_s27 = scalar_lea.hbm %s2007_s9, %s920_s29 }
 0x12e   : > { %p2009_p5 = scmp.ne.s32.totalorder %s2006_s12, 0  ;;  %p1277_p4 = por %p1276_p13, %p1275_p9 }
 0x12f   : > { %612 = vperm.xlu1 %1178, %v598_v41   ;;  %607 = vperm.xlu0 %1179, %v597_v42  }
 0x130   : > { %p1270_p0 = pnand %p1269_p1, %p2009_p5 }
 0x132   : > { %p1271_p11 = pneg %p1270_p0 }
 0x133   : > { %617 = vperm.xlu1 %1178, %v599_v43  }
 0x134   : > { %p1278_p12 = pnand %p1277_p4, %p1271_p11 }
 0x18d   : > { %v1150_v47 = vpop.permute.xlu0 %1149 }
 0x18e   : > { %v1152_v49 = vunpack.i.h.bf16 %v1150_v47  ;;  %v1151_v50 = vunpack.i.l.bf16 %v1150_v47  ;;  %v1160_v51 = vpop.permute.xlu1 %1159 }
 0x18f   : > { %v1162_v52 = vunpack.i.h.bf16 %v1160_v51  ;;  %v1161_v53 = vunpack.i.l.bf16 %v1160_v51 }
 0x190   : > { %v466_v54 = vsel %vm465_vm5, %v1151_v50, %v1152_v49 }
 0x191   : > { %v960_v55 = vpack.c.bf16 %v477_v48, %v466_v54  ;;  %v1155_v56 = vpop.permute.xlu0 %1154  ;;  %v516_v57 = vsel %vm515_vm6, %v1161_v53, %v1162_v52 }
 0x192   : > { %v1157_v58 = vunpack.i.h.bf16 %v1155_v56  ;;  %v1156_v59 = vunpack.i.l.bf16 %v1155_v56 }
 0x193   : > { %961 = vmatprep.subr.bf16.mxu0 %v960_v55  ;;  %976 = vmatprep.subr.bf16.mxu1 %v960_v55 }
 0x194   : > { %v499_v60 = vsel %vm498_vm7, %v1156_v59, %v1157_v58  ;;  %963 = vmatpush3.bf16.msra.mxu0 %v960_v55  ;;  %981 = vmatpush3.bf16.msra.mxu1 %v960_v55 }
 0x195   : > { %v964_v61 = vpack.c.bf16 %v516_v57, %v499_v60  ;;  %v1165_v62 = vpop.permute.xlu0 %1164  ;;  %v1170_v63 = vpop.permute.xlu1 %1169 }
 0x196   : > { %v1167_v0 = vunpack.i.h.bf16 %v1165_v62  ;;  %v1166_v1 = vunpack.i.l.bf16 %v1165_v62  ;;  %v1172_v2 = vunpack.i.h.bf16 %v1170_v63  ;;  %v1171_v4 = vunpack.i.l.bf16 %v1170_v63 }
 0x197   : > { %965 = vmatprep.subr.bf16.mxu0 %v964_v61  ;;  %977 = vmatprep.subr.bf16.mxu1 %v964_v61 }
 0x198   : > { %v535_v5 = vsel %vm534_vm8, %v1166_v1, %v1167_v0  ;;  %967 = vmatpush3.bf16.msra.mxu0 %v964_v61  ;;  %982 = vmatpush3.bf16.msra.mxu1 %v964_v61  ;;  %v552_v8 = vsel %vm551_vm9, %v1171_v4, %v1172_v2 }
 0x199   : > { %v968_v6 = vpack.c.bf16 %v535_v5, %v1797_v3  ;;  %v1175_v7 = vpop.permute.xlu0 %1174  ;;  %v576_v11 = vpop.permute.xlu1 %575  ;;  %v584_v3 = vld [vmem:[#allocation10 + $0x8] sm:$0xff] }
 0x19a   : > { %v1177_v9 = vunpack.i.h.bf16 %v1175_v7  ;;  %v1176_v10 = vunpack.i.l.bf16 %v1175_v7 }
 0x19b   : > { %969 = vmatprep.subr.bf16.mxu0 %v968_v6  ;;  %978 = vmatprep.subr.bf16.mxu1 %v968_v6 }
 0x19c   : > { %v563_v12 = vsel %vm423_vm0, %v1176_v10, %v1177_v9  ;;  %971 = vmatpush3.bf16.msra.mxu0 %v968_v6  ;;  %983 = vmatpush3.bf16.msra.mxu1 %v968_v6 }
 0x19d   : > { %v972_v13 = vpack.c.bf16 %v563_v12, %v552_v8  ;;  %v578_v14 = vpop.permute.xlu0 %577 }
 0x19e   : > { %v580_v15 = vsel %vm579_vm10, %v576_v11, %v578_v14 }
 0x19f   : > { %973 = vmatprep.subr.bf16.mxu0 %v972_v13  ;;  %979 = vmatprep.subr.bf16.mxu1 %v972_v13 }
 0x1a0   : > { %975 = vmatpush3.bf16.msra.mxu0 %v972_v13  ;;  %984 = vmatpush3.bf16.msra.mxu1 %v972_v13 }
 0x1a1   : > { %952 = vmatprep.subr.mxu0 %v580_v15  ;;  %980 = vmatprep.subr.mxu1 %v580_v15 }
 0x1a4   : > { %953 = vmatpush3.msra.mxu0 %v580_v15  ;;  %985 = vmatpush3.msra.mxu1 %v580_v15 }
 0x1a5   : > { %955 = vmatmul.mubr.msk.f32.vlgmr.msra.gmra.mrb[0].mxu0 %vm620_vm4, %v584_v3  ;;  %958 = vmatmul.mubr.msk.f32.vlgmr.msra.gmra.mrb[0].mxu1 %vm620_vm4, %v586_v16 }
 0x1aa   : > { %v603_v17 = vpop.permute.xlu1 %602 }
 0x1ae   : > { %v613_v18 = vpop.permute.xlu1 %612  ;;  %v608_v19 = vpop.permute.xlu0 %607 }
 0x1b2   : > { %v618_v20 = vpop.permute.xlu1 %617 }
 0x278   : > { %v956_v21 = vpop.f32.mrb[0].mxu0  ;;  %v959_v23 = vpop.f32.mrb[0].mxu1 }
 0x279   : > { %v705_v24 = vadd.f32 %v956_v21, %v608_v19  ;;  %v715_v25 = vadd.f32 %v959_v23, %v618_v20  ;;  %v699_v26 = vpop.f32.mrb[1].mxu0  ;;  %v709_v27 = vpop.f32.mrb[1].mxu1 }
 0x27a   : > { %v700_v28 = vadd.f32 %v699_v26, %v603_v17  ;;  %v710_v29 = vadd.f32 %v709_v27, %v613_v18 }
 0x27b   : > { %vm720_vm11 = vcmp.gt.f32.partialorder %v705_v24, 0.0  ;;  %v725_v30 = vmul.f32 %v723_v22, %v705_v24  ;;  %vm722_vm12 = vcmp.gt.f32.partialorder %v715_v25, 0.0  ;;  %v727_v31 = vmul.f32 %v723_v22, %v715_v25 }
 0x27c   : > { %vm719_vm13 = vcmp.gt.f32.partialorder %v700_v28, 0.0  ;;  %v724_v32 = vmul.f32 %v723_v22, %v700_v28  ;;  %vm721_vm14 = vcmp.gt.f32.partialorder %v710_v29, 0.0  ;;  %v726_v33 = vmul.f32 %v723_v22, %v710_v29 }
 0x27d   : > { %v729_v34 = vsel %vm720_vm11, %v705_v24, %v725_v30  ;;  %v731_v35 = vsel %vm722_vm12, %v715_v25, %v727_v31 }
 0x27e   : > { %733 = vst [vmem:[%s408_s2 + $0x8] sm:$0xff] %v729_v34  ;;  %735 = vst [vmem:[%s408_s2 + $0x18] sm:$0xff] %v731_v35  ;;  %v728_v36 = vsel %vm719_vm13, %v700_v28, %v724_v32  ;;  %v730_v37 = vsel %vm721_vm14, %v710_v29, %v726_v33 }
 0x27f   : > { %732 = vst [vmem:[%s408_s2] sm:$0xff] %v728_v36  ;;  %734 = vst [vmem:[%s408_s2 + $0x10] sm:$0xff] %v730_v37 }
 0x280   : > { %1281 = shalt.err (!%p1278_p12)
}
 0x281   : > { %s1282_s1 = scalar_lea.hbm %s1852_s27, 512  ;;  %s1286_s2 = scalar_lea.hbm %s2008_s23, 2048 }
 0x282   : > { %p1283_p3 = scmp.ne.s32.totalorder %s1852_s27, %s1282_s1  ;;  %p1287_p8 = scmp.lt.u32.totalorder %s1852_s27, %s2008_s23 }
 0x283   : > { %p1288_p10 = scmp.lt.u32.totalorder %s1286_s2, %s1282_s1  ;;  %p1290_p1 = scmp.lt.u32.totalorder %s1282_s1, %s1852_s27 }
 0x284   : > { %p1284_p7 = pnand %p1283_p3, %p2009_p5 }
 0x285   : > { %p1289_p6 = por %p1288_p10, %p1287_p8 }
 0x286   : > { %p1285_p2 = pneg %p1284_p7 }
 0x287   : > { %p1291_p0 = por %p1290_p1, %p1289_p6 }
 0x289   : > { %p1292_p11 = pnand %p1291_p0, %p1285_p2 }
 0x28b   : > { %1295 = shalt.err (!%p1292_p11)
}
 0x28c   : > { %s1444_s18 = smov 128   ;;  %s1445_s9 = smov 256  }
 0x28d   : > { %s1446_s22 = smov 8  }
 0x28e   : > { %994 = dma.vmem_to_hbm [thread:$0]  (%p2009_p5), %s1847_s3, 512, %s1852_s27, %s1856_s0, %s1444_s18, %s1445_s9, %s1446_s22  }
 0x28f PF: > { %s2010_s11 = sld [smem:[#allocation16_spill]]  ;;  %s2011_s20 = sld [smem:[#allocation20_spill]] }
 0x290   : > { %p1014_p9 = scmp.ge.s32.totalorder %s1426_s15, 2 }
 0x295   : > { %s766_s19 = sand.u32 1, %s2010_s11   ;;  %p2012_p13 = scmp.ne.s32.totalorder %s2011_s20, 0 }
 0x296   : > { %s767_s1 = scalar_lea.sflag [#allocation7], %s766_s19 }
 0x297   : > { %p1008_p4 = pnand %p1014_p9, %p2012_p13 }
 0x299   : > { %1365 = dma.done.wait (!%p1008_p4), %s767_s1, 512  }
 0x29a   : > { %1367 = vsyncadd (!%p1008_p4), %s767_s1, 4294966784  ;;  %s27_s15 = sadd.s32 1, %s1426_s15   ;;  %s2014_s17 = sld [smem:[#allocation17_spill]] }
 0x29b   : > { %p1885_p12 = scmp.ge.s32.totalorder %s27_s15, 6   ;;  %s2015_s3 = smov %s1641_s26 }
 0x29c   : > { %s2016_s0 = sld [smem:[#allocation21_spill]]  ;;  %s2018_s27 = smov %s1382_s28 }
 0x29d   : > { %s2019_s28 = smov %s1650_s25  ;;  %s2020_s29 = smov %s1390_s30 }
 0x29e   : > { %s2021_s30 = smov %s1394_s8  ;;  %s2022_s8 = smov %s1701_s7 }
 0x29f   : > { %s2023_s9 = smov %s1402_s6  ;;  %s2024_s6 = smov %s1406_s10 }
 0x2a0   : > { %s2017_s26 = smov %s2014_s17  ;;  %s2025_s10 = smov %s2015_s3 }
 0x2a1   : > { %s2026_s11 = smov %s1418_s13  ;;  %s2027_s12 = smov %s1422_s14 }
 0x2a2   : > { %s2028_s13 = smov %s2031_s24  ;;  %s2029_s14 = smov %s2016_s0 }
 0x2a3   :  { %26 = sbr.rel (!%p1885_p12) target bundleno = 21 (0x15), region = 113 }
 0x2aa   :  { %772 = vsyncpa [#allocation6], 1 }
 0x2ab   :  { %774 = vsyncpa [#allocation6 + $0x1], 1 }
 0x2ac   :  { %775 = vsyncpa [#allocation9], 1 }
 0x2ad   :  { %777 = vsyncpa [#allocation9 + $0x1], 1 }
 0x2ae   :  { %778 = vsyncpa [#allocation7], 1 }
 0x2af   :  { %780 = vsyncpa [#allocation7 + $0x1], 1 }

</bundles_post_ra>
